<compile_context>
chip_gen: v5e
topology: v5e:2x2
jax: 0.10.0
libtpu: 0.0.40
codegen_flags: <defaults>
</compile_context>

<pallas_src>
import functools
import math

import jax
import jax.numpy as jnp
from jax.experimental import pallas as pl
from jax.experimental.pallas import tpu as pltpu


# ----------------------------------------------------------------------------
# In-kernel helpers
# ----------------------------------------------------------------------------
def _layernorm(x, g, b, eps):
    mu = jnp.mean(x, axis=-1, keepdims=True)
    xc = x - mu
    var = jnp.mean(xc * xc, axis=-1, keepdims=True)
    return xc * jax.lax.rsqrt(var + eps) * g + b


# ----------------------------------------------------------------------------
# Kernel A: pre-norm + QKV projection (per batch element)
# ----------------------------------------------------------------------------
def _ln_qkv_kernel(x_ref, g_ref, b_ref, wqkv_ref, bqkv_ref,
                   q_ref, k_ref, v_ref, *, eps):
    x = x_ref[0]                                          # (T, D)
    h = _layernorm(x, g_ref[...], b_ref[...], eps)        # (T, D)

    # Three separate lane-dense (T,D)@(D,D) matmuls; no lane-axis slicing of a
    # fused (T,3D) output.
    q = jnp.dot(h, wqkv_ref[0], preferred_element_type=jnp.float32) + bqkv_ref[0]
    k = jnp.dot(h, wqkv_ref[1], preferred_element_type=jnp.float32) + bqkv_ref[1]
    v = jnp.dot(h, wqkv_ref[2], preferred_element_type=jnp.float32) + bqkv_ref[2]

    q_ref[0] = q.astype(q_ref.dtype)
    k_ref[0] = k.astype(k_ref.dtype)
    v_ref[0] = v.astype(v_ref.dtype)


def ln_qkv(x, ln_g, ln_b, w_qkv, b_qkv):
    B, T, D = x.shape
    kernel = functools.partial(_ln_qkv_kernel, eps=1e-5)
    out_sds = jax.ShapeDtypeStruct((B, T, D), x.dtype)
    return pl.pallas_call(
        kernel,
        out_shape=(out_sds, out_sds, out_sds),
        grid_spec=pltpu.PrefetchScalarGridSpec(
            num_scalar_prefetch=0,
            grid=(B,),
            in_specs=[
                pl.BlockSpec((1, T, D), lambda i: (i, 0, 0)),
                pl.BlockSpec((1, D), lambda i: (0, 0)),
                pl.BlockSpec((1, D), lambda i: (0, 0)),
                pl.BlockSpec((3, D, D), lambda i: (0, 0, 0)),   # grid-invariant
                pl.BlockSpec((3, 1, D), lambda i: (0, 0, 0)),
            ],
            out_specs=(
                pl.BlockSpec((1, T, D), lambda i: (i, 0, 0)),
                pl.BlockSpec((1, T, D), lambda i: (i, 0, 0)),
                pl.BlockSpec((1, T, D), lambda i: (i, 0, 0)),
            ),
        ),
        compiler_params=pltpu.CompilerParams(
            dimension_semantics=("parallel",)),
    )(x, ln_g, ln_b, w_qkv, b_qkv)


# ----------------------------------------------------------------------------
# Kernel B: causal attention (heads batched) + out-proj + residual + FFN block
# ----------------------------------------------------------------------------
def _attn_ffn_kernel(x_ref, q_ref, k_ref, v_ref, woh_ref, bo_ref,
                     g2_ref, be2_ref, w1_ref, b1_ref, w2_ref, b2_ref,
                     o_ref, *, scale, eps):
    x = x_ref[0]                                          # (T, D) residual stream
    q = q_ref[0]                                          # (H, T, dh)
    k = k_ref[0]
    v = v_ref[0]
    H, T, dh = q.shape

    # ---- causal multi-head attention, heads as a leading batch dim ----
    s = jnp.einsum('htd,hsd->hts', q, k,
                   preferred_element_type=jnp.float32) * scale        # (H, T, T)
    row = jax.lax.broadcasted_iota(jnp.int32, (H, T, T), 1)
    col = jax.lax.broadcasted_iota(jnp.int32, (H, T, T), 2)
    s = jnp.where(col <= row, s, -1e30)

    m = jnp.max(s, axis=-1, keepdims=True)
    p = jnp.exp(s - m)
    denom = jnp.sum(p, axis=-1, keepdims=True)
    # approx=True routes to the EUP slot (free); kept exact here for the f32 check.
    p = p * pl.reciprocal(denom, approx=False)

    ctx = jnp.einsum('hts,hsd->htd', p, v,
                     preferred_element_type=jnp.float32)              # (H, T, dh)

    # ---- head merge fused into the output projection ----
    # attn_out @ W_o == sum_h ctx[h] @ W_o[h*dh:(h+1)*dh, :]
    y_h = jnp.einsum('htd,hdc->htc', ctx, woh_ref[...],
                     preferred_element_type=jnp.float32)              # (H, T, D)
    attn_out = jnp.sum(y_h, axis=0) + bo_ref[...]                     # (T, D)

    x = x + attn_out                                                  # residual 1

    # ---- pre-norm 2 + feed-forward + residual ----
    h2 = _layernorm(x, g2_ref[...], be2_ref[...], eps)
    f = jnp.dot(h2, w1_ref[...], preferred_element_type=jnp.float32) + b1_ref[...]
    f = jnp.maximum(f, 0.0)
    f = jnp.dot(f, w2_ref[...], preferred_element_type=jnp.float32) + b2_ref[...]

    o_ref[0] = (x + f).astype(o_ref.dtype)


def attn_ffn(x, q, k, v, w_out_h, b_out, ln2_g, ln2_b,
             w_ff1, b_ff1, w_ff2, b_ff2, *, scale):
    B, T, D = x.shape
    _, H, _, dh = q.shape
    F = w_ff1.shape[1]
    kernel = functools.partial(_attn_ffn_kernel, scale=scale, eps=1e-5)
    return pl.pallas_call(
        kernel,
        out_shape=jax.ShapeDtypeStruct((B, T, D), x.dtype),
        grid_spec=pltpu.PrefetchScalarGridSpec(
            num_scalar_prefetch=0,
            grid=(B,),
            in_specs=[
                pl.BlockSpec((1, T, D), lambda i: (i, 0, 0)),
                pl.BlockSpec((1, H, T, dh), lambda i: (i, 0, 0, 0)),
                pl.BlockSpec((1, H, T, dh), lambda i: (i, 0, 0, 0)),
                pl.BlockSpec((1, H, T, dh), lambda i: (i, 0, 0, 0)),
                pl.BlockSpec((H, dh, D), lambda i: (0, 0, 0)),   # grid-invariant
                pl.BlockSpec((1, D), lambda i: (0, 0)),
                pl.BlockSpec((1, D), lambda i: (0, 0)),
                pl.BlockSpec((1, D), lambda i: (0, 0)),
                pl.BlockSpec((D, F), lambda i: (0, 0)),
                pl.BlockSpec((1, F), lambda i: (0, 0)),
                pl.BlockSpec((F, D), lambda i: (0, 0)),
                pl.BlockSpec((1, D), lambda i: (0, 0)),
            ],
            out_specs=pl.BlockSpec((1, T, D), lambda i: (i, 0, 0)),
        ),
        compiler_params=pltpu.CompilerParams(
            dimension_semantics=("parallel",)),
    )(x, q, k, v, w_out_h, b_out, ln2_g, ln2_b, w_ff1, b_ff1, w_ff2, b_ff2)


# ----------------------------------------------------------------------------
# Kernel C: final 256-way decoder (lane-dense output)
# ----------------------------------------------------------------------------
def _decoder_kernel(x_ref, w_ref, b_ref, o_ref):
    x = x_ref[0]                                          # (T, D)
    y = jnp.dot(x, w_ref[...], preferred_element_type=jnp.float32) + b_ref[...]
    o_ref[0] = y.astype(o_ref.dtype)


def decode(x, w, b):
    B, T, D = x.shape
    V = w.shape[1]
    return pl.pallas_call(
        _decoder_kernel,
        out_shape=jax.ShapeDtypeStruct((B, T, V), x.dtype),
        grid_spec=pltpu.PrefetchScalarGridSpec(
            num_scalar_prefetch=0,
            grid=(B,),
            in_specs=[
                pl.BlockSpec((1, T, D), lambda i: (i, 0, 0)),
                pl.BlockSpec((D, V), lambda i: (0, 0)),
                pl.BlockSpec((1, V), lambda i: (0, 0)),
            ],
            out_specs=pl.BlockSpec((1, T, V), lambda i: (i, 0, 0)),
        ),
        compiler_params=pltpu.CompilerParams(
            dimension_semantics=("parallel",)),
    )(x, w, b)


# ----------------------------------------------------------------------------
# Full HandCraftLM forward (wrapper does embedding gather + layout plumbing only)
# ----------------------------------------------------------------------------
def handcraft_lm_forward(tokens, params, *, num_heads):
    """tokens: (seq_len, batch) int32. Returns logits (seq_len, batch, 256)."""
    T, B = tokens.shape
    D = params['emb'].shape[1]
    dh = D // num_heads
    scale = 1.0 / math.sqrt(dh)

    # byte embedding, shift-right with zeros, positional encoding (dropout p=0).
    emb = jnp.take(params['emb'], tokens, axis=0)                      # (T, B, D)
    emb = jnp.concatenate([jnp.zeros((1, B, D), emb.dtype), emb[:-1]], axis=0)
    emb = emb + params['pos']                                          # (T, 1, D)
    x = jnp.transpose(emb, (1, 0, 2))                                  # (B, T, D)

    for lp in params['layers']:
        q, k, v = ln_qkv(x, lp['ln1_g'], lp['ln1_b'], lp['w_qkv'], lp['b_qkv'])

        def split_heads(t):                                            # (B,T,D)->(B,H,T,dh)
            return t.reshape(B, T, num_heads, dh).transpose(0, 2, 1, 3)

        qh, kh, vh = split_heads(q), split_heads(k), split_heads(v)
        w_out_h = lp['w_out'].reshape(num_heads, dh, D)                # per-head slabs

        x = attn_ffn(x, qh, kh, vh, w_out_h, lp['b_out'],
                     lp['ln2_g'], lp['ln2_b'],
                     lp['w_ff1'], lp['b_ff1'], lp['w_ff2'], lp['b_ff2'],
                     scale=scale)

    logits = decode(x, params['w_dec'], params['b_dec'])               # (B, T, 256)
    return jnp.transpose(logits, (1, 0, 2))                            # (T, B, 256)


# ----------------------------------------------------------------------------
# Pure-JAX reference (mirrors the PyTorch forward, dropout = 0)
# ----------------------------------------------------------------------------
def handcraft_lm_reference(tokens, params, *, num_heads):
    T, B = tokens.shape
    D = params['emb'].shape[1]
    dh = D // num_heads
    scale = 1.0 / math.sqrt(dh)
    eps = 1e-5

    def layernorm(x, g, b):
        mu = jnp.mean(x, axis=-1, keepdims=True)
        xc = x - mu
        var = jnp.mean(xc * xc, axis=-1, keepdims=True)
        return xc * jax.lax.rsqrt(var + eps) * g + b

    emb = jnp.take(params['emb'], tokens, axis=0)
    emb = jnp.concatenate([jnp.zeros((1, B, D), emb.dtype), emb[:-1]], axis=0)
    x = emb + params['pos']                                            # (T, B, D)

    mask = jnp.tril(jnp.ones((T, T), dtype=bool))
    for lp in params['layers']:
        h = layernorm(x, lp['ln1_g'], lp['ln1_b'])
        q = h @ lp['w_qkv'][0] + lp['b_qkv'][0]
        k = h @ lp['w_qkv'][1] + lp['b_qkv'][1]
        v = h @ lp['w_qkv'][2] + lp['b_qkv'][2]

        def sh(t):                                                     # (T,B,D)->(B,H,T,dh)
            return t.reshape(T, B, num_heads, dh).transpose(1, 2, 0, 3)

        qh, kh, vh = sh(q), sh(k), sh(v)
        s = jnp.einsum('bhtd,bhsd->bhts', qh, kh) * scale
        s = jnp.where(mask, s, -1e30)
        p = jax.nn.softmax(s, axis=-1)
        o = jnp.einsum('bhts,bhsd->bhtd', p, vh)
        o = o.transpose(2, 0, 1, 3).reshape(T, B, D)
        x = x + (o @ lp['w_out'] + lp['b_out'])

        h2 = layernorm(x, lp['ln2_g'], lp['ln2_b'])
        f = jnp.maximum(h2 @ lp['w_ff1'] + lp['b_ff1'], 0.0)
        x = x + (f @ lp['w_ff2'] + lp['b_ff2'])

    return x @ params['w_dec'] + params['b_dec']                       # (T, B, 256)


# ----------------------------------------------------------------------------
# Deterministic parameter init
# ----------------------------------------------------------------------------
def init_params(key, *, seq_len, d_model, num_heads, ff_dim, n_layers, vocab=256):
    del num_heads  # head count only affects how weights are viewed, not shapes
    k_pos, k_emb, k_dec, k_layers = jax.random.split(key, 4)
    bd = 1.0 / math.sqrt(d_model)
    bf = 1.0 / math.sqrt(ff_dim)

    kd1, kd2 = jax.random.split(k_dec)
    params = {
        'pos': jax.random.normal(k_pos, (seq_len, 1, d_model), jnp.float32),
        'emb': jax.random.normal(k_emb, (vocab, d_model), jnp.float32),
        'w_dec': jax.random.uniform(kd1, (d_model, vocab), jnp.float32, -bd, bd),
        'b_dec': jax.random.uniform(kd2, (1, vocab), jnp.float32, -bd, bd),
        'layers': [],
    }
    for lk in jax.random.split(k_layers, n_layers):
        ks = jax.random.split(lk, 12)
        params['layers'].append({
            'ln1_g': 1.0 + 0.1 * jax.random.normal(ks[0], (1, d_model), jnp.float32),
            'ln1_b': 0.1 * jax.random.normal(ks[1], (1, d_model), jnp.float32),
            'w_qkv': jax.random.uniform(ks[2], (3, d_model, d_model), jnp.float32, -bd, bd),
            'b_qkv': jax.random.uniform(ks[3], (3, 1, d_model), jnp.float32, -bd, bd),
            'w_out': jax.random.uniform(ks[4], (d_model, d_model), jnp.float32, -bd, bd),
            'b_out': jax.random.uniform(ks[5], (1, d_model), jnp.float32, -bd, bd),
            'ln2_g': 1.0 + 0.1 * jax.random.normal(ks[6], (1, d_model), jnp.float32),
            'ln2_b': 0.1 * jax.random.normal(ks[7], (1, d_model), jnp.float32),
            'w_ff1': jax.random.uniform(ks[8], (d_model, ff_dim), jnp.float32, -bd, bd),
            'b_ff1': jax.random.uniform(ks[9], (1, ff_dim), jnp.float32, -bd, bd),
            'w_ff2': jax.random.uniform(ks[10], (ff_dim, d_model), jnp.float32, -bf, bf),
            'b_ff2': jax.random.uniform(ks[11], (1, d_model), jnp.float32, -bf, bf),
        })
    return params


if __name__ == "__main__":
    SEQ_LEN = 16
    BATCH = 2
    D_MODEL = 128       # multiple of 128 -> lane-dense loads/stores
    NUM_HEADS = 8       # head_dim = 16
    FF_DIM = 256
    N_LAYERS = 2

    key = jax.random.PRNGKey(0)
    k_tok, k_par = jax.random.split(key)
    tokens = jax.random.randint(k_tok, (SEQ_LEN, BATCH), 0, 256, dtype=jnp.int32)
    params = init_params(k_par, seq_len=SEQ_LEN, d_model=D_MODEL,
                         num_heads=NUM_HEADS, ff_dim=FF_DIM, n_layers=N_LAYERS)

    out = handcraft_lm_forward(tokens, params, num_heads=NUM_HEADS)
    out = jax.block_until_ready(out)

    ref = handcraft_lm_reference(tokens, params, num_heads=NUM_HEADS)
    ref = jax.block_until_ready(ref)

    assert out.shape == (SEQ_LEN, BATCH, 256), out.shape
    max_err = float(jnp.max(jnp.abs(out - ref)))
    assert max_err < 1e-3, max_err
    print("KERNEL_OK")
</pallas_src>

<mosaic_0001>
module attributes {stable_mosaic.version = 11 : i64} {
  func.func @_ln_qkv_kernel(%arg0: i32, %arg1: memref<1x16x128xf32, #tpu.memory_space<vmem>>, %arg2: memref<1x128xf32, #tpu.memory_space<vmem>>, %arg3: memref<1x128xf32, #tpu.memory_space<vmem>>, %arg4: memref<3x128x128xf32, #tpu.memory_space<vmem>>, %arg5: memref<3x1x128xf32, #tpu.memory_space<vmem>>, %arg6: memref<1x16x128xf32, #tpu.memory_space<vmem>>, %arg7: memref<1x16x128xf32, #tpu.memory_space<vmem>>, %arg8: memref<1x16x128xf32, #tpu.memory_space<vmem>>) attributes {dimension_semantics = [#tpu.dimension_semantics<parallel>], iteration_bounds = array<i64: 2>, scalar_prefetch = 0 : i64, scratch_operands = 0 : i64, tpu.core_type = #tpu.core_type<tc>, window_params = [{transform_indices = @transform_0, window_bounds = array<i64: 1, 16, 128>}, {pipeline_mode = #tpu.pipeline_mode<synchronous>, transform_indices = @transform_1, window_bounds = array<i64: 1, 128>}, {pipeline_mode = #tpu.pipeline_mode<synchronous>, transform_indices = @transform_2, window_bounds = array<i64: 1, 128>}, {pipeline_mode = #tpu.pipeline_mode<synchronous>, transform_indices = @transform_3, window_bounds = array<i64: 3, 128, 128>}, {pipeline_mode = #tpu.pipeline_mode<synchronous>, transform_indices = @transform_4, window_bounds = array<i64: 3, 1, 128>}, {transform_indices = @transform_5, window_bounds = array<i64: 1, 16, 128>}, {transform_indices = @transform_6, window_bounds = array<i64: 1, 16, 128>}, {transform_indices = @transform_7, window_bounds = array<i64: 1, 16, 128>}]} {
    %c0 = arith.constant 0 : index
    %c0_0 = arith.constant 0 : index
    %c0_1 = arith.constant 0 : index
    %0 = vector.load %arg1[%c0, %c0_0, %c0_1] : memref<1x16x128xf32, #tpu.memory_space<vmem>>, vector<1x16x128xf32>
    %1 = vector.shape_cast %0 : vector<1x16x128xf32> to vector<16x128xf32>
    %c0_2 = arith.constant 0 : index
    %c0_3 = arith.constant 0 : index
    %2 = vector.load %arg2[%c0_2, %c0_3] : memref<1x128xf32, #tpu.memory_space<vmem>>, vector<1x128xf32>
    %c0_4 = arith.constant 0 : index
    %c0_5 = arith.constant 0 : index
    %3 = vector.load %arg3[%c0_4, %c0_5] : memref<1x128xf32, #tpu.memory_space<vmem>>, vector<1x128xf32>
    %cst = arith.constant dense<0.000000e+00> : vector<16xf32>
    %4 = vector.multi_reduction <add>, %1, %cst [1] : vector<16x128xf32> to vector<16xf32>
    %5 = vector.shape_cast %4 : vector<16xf32> to vector<16x1xf32>
    %cst_6 = arith.constant 1.280000e+02 : f32
    %6 = vector.broadcast %cst_6 : f32 to vector<16x1xf32>
    %7 = arith.divf %5, %6 : vector<16x1xf32>
    %8 = vector.broadcast %7 : vector<16x1xf32> to vector<16x128xf32>
    %9 = arith.subf %1, %8 : vector<16x128xf32>
    %10 = arith.mulf %9, %9 : vector<16x128xf32>
    %cst_7 = arith.constant dense<0.000000e+00> : vector<16xf32>
    %11 = vector.multi_reduction <add>, %10, %cst_7 [1] : vector<16x128xf32> to vector<16xf32>
    %12 = vector.shape_cast %11 : vector<16xf32> to vector<16x1xf32>
    %cst_8 = arith.constant 1.280000e+02 : f32
    %13 = vector.broadcast %cst_8 : f32 to vector<16x1xf32>
    %14 = arith.divf %12, %13 : vector<16x1xf32>
    %cst_9 = arith.constant 9.99999974E-6 : f32
    %15 = vector.broadcast %cst_9 : f32 to vector<16x1xf32>
    %16 = arith.addf %14, %15 : vector<16x1xf32>
    %17 = math.rsqrt %16 : vector<16x1xf32>
    %18 = vector.broadcast %17 : vector<16x1xf32> to vector<16x128xf32>
    %19 = arith.mulf %9, %18 : vector<16x128xf32>
    %20 = vector.broadcast %2 : vector<1x128xf32> to vector<16x128xf32>
    %21 = arith.mulf %19, %20 : vector<16x128xf32>
    %22 = vector.broadcast %3 : vector<1x128xf32> to vector<16x128xf32>
    %23 = arith.addf %21, %22 : vector<16x128xf32>
    %c0_10 = arith.constant 0 : index
    %c0_11 = arith.constant 0 : index
    %c0_12 = arith.constant 0 : index
    %24 = vector.load %arg4[%c0_10, %c0_11, %c0_12] : memref<3x128x128xf32, #tpu.memory_space<vmem>>, vector<1x128x128xf32>
    %25 = vector.shape_cast %24 : vector<1x128x128xf32> to vector<128x128xf32>
    %cst_13 = arith.constant dense<0.000000e+00> : vector<16x128xf32>
    %26 = tpu.matmul %23, %25, %cst_13 {dimension_numbers = #tpu.dot_dimension_numbers<[1], [0], [0], [1], [0, 0, 1, 1], [], []>} : vector<16x128xf32>, vector<128x128xf32>, vector<16x128xf32> -> vector<16x128xf32>
    %c0_14 = arith.constant 0 : index
    %c0_15 = arith.constant 0 : index
    %c0_16 = arith.constant 0 : index
    %27 = vector.load %arg5[%c0_14, %c0_15, %c0_16] : memref<3x1x128xf32, #tpu.memory_space<vmem>>, vector<1x1x128xf32>
    %28 = vector.shape_cast %27 : vector<1x1x128xf32> to vector<1x128xf32>
    %29 = vector.broadcast %28 : vector<1x128xf32> to vector<16x128xf32>
    %30 = arith.addf %26, %29 : vector<16x128xf32>
    %c1 = arith.constant 1 : index
    %c0_17 = arith.constant 0 : index
    %c0_18 = arith.constant 0 : index
    %31 = vector.load %arg4[%c1, %c0_17, %c0_18] : memref<3x128x128xf32, #tpu.memory_space<vmem>>, vector<1x128x128xf32>
    %32 = vector.shape_cast %31 : vector<1x128x128xf32> to vector<128x128xf32>
    %cst_19 = arith.constant dense<0.000000e+00> : vector<16x128xf32>
    %33 = tpu.matmul %23, %32, %cst_19 {dimension_numbers = #tpu.dot_dimension_numbers<[1], [0], [0], [1], [0, 0, 1, 1], [], []>} : vector<16x128xf32>, vector<128x128xf32>, vector<16x128xf32> -> vector<16x128xf32>
    %c1_20 = arith.constant 1 : index
    %c0_21 = arith.constant 0 : index
    %c0_22 = arith.constant 0 : index
    %34 = vector.load %arg5[%c1_20, %c0_21, %c0_22] : memref<3x1x128xf32, #tpu.memory_space<vmem>>, vector<1x1x128xf32>
    %35 = vector.shape_cast %34 : vector<1x1x128xf32> to vector<1x128xf32>
    %36 = vector.broadcast %35 : vector<1x128xf32> to vector<16x128xf32>
    %37 = arith.addf %33, %36 : vector<16x128xf32>
    %c2 = arith.constant 2 : index
    %c0_23 = arith.constant 0 : index
    %c0_24 = arith.constant 0 : index
    %38 = vector.load %arg4[%c2, %c0_23, %c0_24] : memref<3x128x128xf32, #tpu.memory_space<vmem>>, vector<1x128x128xf32>
    %39 = vector.shape_cast %38 : vector<1x128x128xf32> to vector<128x128xf32>
    %cst_25 = arith.constant dense<0.000000e+00> : vector<16x128xf32>
    %40 = tpu.matmul %23, %39, %cst_25 {dimension_numbers = #tpu.dot_dimension_numbers<[1], [0], [0], [1], [0, 0, 1, 1], [], []>} : vector<16x128xf32>, vector<128x128xf32>, vector<16x128xf32> -> vector<16x128xf32>
    %c2_26 = arith.constant 2 : index
    %c0_27 = arith.constant 0 : index
    %c0_28 = arith.constant 0 : index
    %41 = vector.load %arg5[%c2_26, %c0_27, %c0_28] : memref<3x1x128xf32, #tpu.memory_space<vmem>>, vector<1x1x128xf32>
    %42 = vector.shape_cast %41 : vector<1x1x128xf32> to vector<1x128xf32>
    %43 = vector.broadcast %42 : vector<1x128xf32> to vector<16x128xf32>
    %44 = arith.addf %40, %43 : vector<16x128xf32>
    %c0_29 = arith.constant 0 : index
    %c0_30 = arith.constant 0 : index
    %c0_31 = arith.constant 0 : index
    %45 = vector.load %arg6[%c0_29, %c0_30, %c0_31] : memref<1x16x128xf32, #tpu.memory_space<vmem>>, vector<1x16x128xf32>
    %46 = vector.shape_cast %45 : vector<1x16x128xf32> to vector<16x128xf32>
    %47 = vector.shape_cast %30 : vector<16x128xf32> to vector<1x16x128xf32>
    tpu.vector_store %arg6[%c0_29, %c0_30, %c0_31], %47 {strides = array<i32>} : memref<1x16x128xf32, #tpu.memory_space<vmem>>, vector<1x16x128xf32>,
    %c0_32 = arith.constant 0 : index
    %c0_33 = arith.constant 0 : index
    %c0_34 = arith.constant 0 : index
    %48 = vector.load %arg7[%c0_32, %c0_33, %c0_34] : memref<1x16x128xf32, #tpu.memory_space<vmem>>, vector<1x16x128xf32>
    %49 = vector.shape_cast %48 : vector<1x16x128xf32> to vector<16x128xf32>
    %50 = vector.shape_cast %37 : vector<16x128xf32> to vector<1x16x128xf32>
    tpu.vector_store %arg7[%c0_32, %c0_33, %c0_34], %50 {strides = array<i32>} : memref<1x16x128xf32, #tpu.memory_space<vmem>>, vector<1x16x128xf32>,
    %c0_35 = arith.constant 0 : index
    %c0_36 = arith.constant 0 : index
    %c0_37 = arith.constant 0 : index
    %51 = vector.load %arg8[%c0_35, %c0_36, %c0_37] : memref<1x16x128xf32, #tpu.memory_space<vmem>>, vector<1x16x128xf32>
    %52 = vector.shape_cast %51 : vector<1x16x128xf32> to vector<16x128xf32>
    %53 = vector.shape_cast %44 : vector<16x128xf32> to vector<1x16x128xf32>
    tpu.vector_store %arg8[%c0_35, %c0_36, %c0_37], %53 {strides = array<i32>} : memref<1x16x128xf32, #tpu.memory_space<vmem>>, vector<1x16x128xf32>,
    return
  }
  func.func @transform_0(%arg0: i32) -> (i32, i32, i32) {
    %c0_i32 = arith.constant 0 : i32
    %c0_i32_0 = arith.constant 0 : i32
    %c0_i32_1 = arith.constant 0 : i32
    return %arg0, %c0_i32, %c0_i32_0 : i32, i32, i32
  }
  func.func @transform_1(%arg0: i32) -> (i32, i32) {
    %c0_i32 = arith.constant 0 : i32
    %c0_i32_0 = arith.constant 0 : i32
    %c0_i32_1 = arith.constant 0 : i32
    return %c0_i32, %c0_i32_0 : i32, i32
  }
  func.func @transform_2(%arg0: i32) -> (i32, i32) {
    %c0_i32 = arith.constant 0 : i32
    %c0_i32_0 = arith.constant 0 : i32
    %c0_i32_1 = arith.constant 0 : i32
    return %c0_i32, %c0_i32_0 : i32, i32
  }
  func.func @transform_3(%arg0: i32) -> (i32, i32, i32) {
    %c0_i32 = arith.constant 0 : i32
    %c0_i32_0 = arith.constant 0 : i32
    %c0_i32_1 = arith.constant 0 : i32
    %c0_i32_2 = arith.constant 0 : i32
    return %c0_i32, %c0_i32_0, %c0_i32_1 : i32, i32, i32
  }
  func.func @transform_4(%arg0: i32) -> (i32, i32, i32) {
    %c0_i32 = arith.constant 0 : i32
    %c0_i32_0 = arith.constant 0 : i32
    %c0_i32_1 = arith.constant 0 : i32
    %c0_i32_2 = arith.constant 0 : i32
    return %c0_i32, %c0_i32_0, %c0_i32_1 : i32, i32, i32
  }
  func.func @transform_5(%arg0: i32) -> (i32, i32, i32) {
    %c0_i32 = arith.constant 0 : i32
    %c0_i32_0 = arith.constant 0 : i32
    %c0_i32_1 = arith.constant 0 : i32
    return %arg0, %c0_i32, %c0_i32_0 : i32, i32, i32
  }
  func.func @transform_6(%arg0: i32) -> (i32, i32, i32) {
    %c0_i32 = arith.constant 0 : i32
    %c0_i32_0 = arith.constant 0 : i32
    %c0_i32_1 = arith.constant 0 : i32
    return %arg0, %c0_i32, %c0_i32_0 : i32, i32, i32
  }
  func.func @transform_7(%arg0: i32) -> (i32, i32, i32) {
    %c0_i32 = arith.constant 0 : i32
    %c0_i32_0 = arith.constant 0 : i32
    %c0_i32_1 = arith.constant 0 : i32
    return %arg0, %c0_i32, %c0_i32_0 : i32, i32, i32
  }
}

</mosaic_0001>

<bundles_post_ra>
// kernel: tpu_custom_call.1
= control target key start
LH: loop header
LB: loop body
LE: loop exit
PB: predicated region body
PF: predicated region fallthrough
CT: control target
= control target key end

     0   :  { %s1518_s0 = inlined_call_operand.hbm [shape: f32[2,16,128], index: 0, kind: input, shape index: {}]   ;;  %s1519_s1 = inlined_call_operand.hbm [shape: f32[1,128], index: 1, kind: input, shape index: {}]   ;;  %s1520_s2 = inlined_call_operand.hbm [shape: f32[1,128], index: 2, kind: input, shape index: {}]   ;;  %s1521_s3 = inlined_call_operand.hbm [shape: f32[3,128,128], index: 3, kind: input, shape index: {}]   ;;  %s1522_s4 = inlined_call_operand.vmem [shape: f32[3,1,128], index: 4, kind: input, shape index: {}]   ;;  %s1523_s5 = inlined_call_operand.hbm [shape: f32[2,16,128], index: 5, kind: output, shape index: {0}]   ;;  %s1524_s6 = inlined_call_operand.hbm [shape: f32[2,16,128], index: 6, kind: output, shape index: {1}]   ;;  %s1525_s7 = inlined_call_operand.hbm [shape: f32[2,16,128], index: 7, kind: output, shape index: {2}]  }
   0x1   :  { %1529 = sst [smem:[#allocation20_spill]] %s1518_s0 }
   0x2   :  { %1530 = sst [smem:[#allocation21_spill]] %s1519_s1 }
   0x3   :  { %1531 = sst [smem:[#allocation22_spill]] %s1520_s2 }
   0x4   :  { %1532 = sst [smem:[#allocation23_spill]] %s1521_s3 }
   0x5   :  { %1533 = sst [smem:[#allocation24_spill]] %s1522_s4 }
   0x6   :  { %13 = vsyncpa [#allocation3], 0 }
   0x7   :  { %15 = vsyncpa [#allocation3 + $0x1], 0 }
   0x8   :  { %16 = vsyncpa [#allocation6], 0 }
   0x9   :  { %17 = vsyncpa [#allocation9], 0 }
   0xa   :  { %18 = vsyncpa [#allocation4], 0 }
   0xb   :  { %20 = vsyncpa [#allocation4 + $0x1], 0 }
   0xc   :  { %21 = vsyncpa [#allocation12], 0 }
   0xd   :  { %23 = vsyncpa [#allocation12 + $0x1], 0  ;;  %s1245_s24 = smov 0   ;;  %s1247_s25 = smov 0  }
   0xe   :  { %s1249_s26 = smov 0   ;;  %s1251_s27 = smov 0  }
   0xf LB: > { %s1266_s28 = sadd.s32 4294967295, %s1195_s27   ;;  %s1526_s29 = sadd.s32 4294967294, %s1195_s27   ;;  %s1195_s27 = sphi %s1251_s27, %s1554_s27   ;;  %s1191_s26 = sphi %s1249_s26, %s1553_s26   ;;  %s1187_s25 = sphi %s1247_s25, %s1552_s25   ;;  %s1183_s24 = sphi %s1245_s24, %s1551_s24  }
  0x10   : > { %p49_p0 = scmp.ne.s32.totalorder %s1187_s25, %s1183_s24  ;;  %p50_p1 = scmp.eq.s32.totalorder %s1266_s28, 0 }
  0x11   : > { %p157_p2 = scmp.eq.s32.totalorder %s1266_s28, 1  ;;  %p163_p3 = scmp.eq.s32.totalorder %s1526_s29, 1 }
  0x12   : > { %p1277_p4 = por %p50_p1, %p49_p0  ;;  %p789_p5 = scmp.ge.s32.totalorder %s1195_s27, 1 }
  0x13   : > { %p1282_p6 = por %p163_p3, %p49_p0  ;;  %p222_p7 = scmp.lt.s32.totalorder %s1195_s27, 3 }
  0x14   : > { %s1536_s1 = sld [smem:[#allocation21_spill]]  ;;  %s1197_s13 = smov [#allocation5]  }
  0x15   : > { %p1290_p8 = pnand %p789_p5, %p222_p7  ;;  %s236_s14 = sshll.u32 %s1197_s13, 4  ;;  %s237_s14 = int_to_ptr.vmem [resolvable:$true] %s236_s14 }
  0x16   : > { %s1538_s2 = sld [smem:[#allocation22_spill]]  ;;  %s1198_s22 = smov [#allocation7]  }
  0x17   : > { %p858_p10 = pneg %p1290_p8  ;;  %s1540_s3 = sld [smem:[#allocation23_spill]] }
  0x18   : > { %s248_s23 = sshll.u32 %s1198_s22, 4  ;;  %s1199_s9 = smov [#allocation8]   ;;  %s249_s23 = int_to_ptr.vmem [resolvable:$true] %s248_s23 }
  0x19   : > { %p1302_p11 = pnand %p858_p10, %p50_p1  ;;  %s259_s10 = sshll.u32 %s1199_s9, 4  ;;  %s260_s10 = int_to_ptr.vmem [resolvable:$true] %s259_s10 }
  0x1a   : > { %s234_s11 = sshll.u32 %s1536_s1, 4  ;;  %s1527_s13 = smov 128   ;;  %s235_s11 = int_to_ptr.hbm [resolvable:$true] %s234_s11 }
  0x1b   : > { %861 = dma.hbm_to_vmem [thread:$0]  (!%p1302_p11), %s235_s11, 16, %s237_s14, [#allocation6]  }
  0x1c   : > { %s246_s17 = sshll.u32 %s1538_s2, 4  ;;  %s1528_s15 = smov 8   ;;  %s247_s17 = int_to_ptr.hbm [resolvable:$true] %s246_s17 }
  0x1d   : > { %s257_s21 = sshll.u32 %s1540_s3, 4  ;;  %s1319_s11 = sadd.s32 1, %s1195_s27   ;;  %s258_s21 = int_to_ptr.hbm [resolvable:$true] %s257_s21 }
  0x1e   : > { %864 = dma.hbm_to_vmem [thread:$0]  (!%p1302_p11), %s247_s17, 16, %s249_s23, [#allocation6]  }
  0x1f   : > { %867 = dma.hbm_to_vmem [thread:$0]  (!%p1302_p11), %s258_s21, 6144, %s260_s10, [#allocation9], %s1527_s13, %s1527_s13, %s1528_s15  }
  0x20   : > { %s33_s14 = ssub.s32 %s1195_s27, %s1319_s11  ;;  %s36_s16 = sadd.s32 1, %s1191_s26 }
  0x21   : > { %p34_p12 = scmp.eq.s32.totalorder %s33_s14, 0  ;;  %p43_p13 = scmp.ne.s32.totalorder %s1191_s26, %s1187_s25 }
  0x22   : > { %p44_p0 = scmp.eq.s32.totalorder %s1195_s27, 0  ;;  %p885_p5 = scmp.lt.s32.totalorder %s1195_s27, 2 }
  0x23   : > { %s1328_s17 = scalar_select %p34_p12, %s1191_s26, %s36_s16  }
  0x24   : > { %p1332_p3 = por %p157_p2, %p43_p13  ;;  %s276_s18 = sand.u32 1, %s1191_s26  }
  0x25   : > { %1541 = sst [smem:[#allocation19_spill]] %s1328_s17  ;;  %s818_s20 = sshll.u32 %s1195_s27, 4 }
  0x26   : > { %p45_p7 = por %p44_p0, %p43_p13  ;;  %s794_s21 = sshll.u32 %s276_s18, 4 }
  0x27   : > { %s1543_s0 = sld [smem:[#allocation20_spill]]  ;;  %s280_s14 = scalar_lea.vmem [#allocation2], %s794_s21 }
  0x28   : > { %s288_s29 = sshll.u32 %s280_s14, 4  ;;  %p1342_p10 = pnand %p885_p5, %p45_p7  ;;  %s289_s29 = int_to_ptr.vmem [resolvable:$true] %s288_s29 }
  0x29   : > { %s277_s13 = scalar_lea.sflag [#allocation3], %s276_s18 }
  0x2a   : > { %p1035_p11 = pneg %p1342_p10 }
  0x2d   : > { %s285_s9 = scalar_lea.hbm %s1543_s0, %s818_s20  ;;  %s1038_s21 = scalar_lea.hbm %s1543_s0, 32 }
  0x2e   : > { %s286_s10 = sshll.u32 %s285_s9, 4  ;;  %s287_s10 = int_to_ptr.hbm [resolvable:$true] %s286_s10 }
  0x2f   : > { %s1031_s15 = sshra.s32 %s287_s10, 4  ;;  %s1032_s15 = int_to_ptr.hbm [resolvable:$true] %s1031_s15 }
  0x30   : > { %s1033_s1 = scalar_lea.hbm %s1032_s15, 16  ;;  %p1039_p0 = scmp.lt.s32.totalorder %s1032_s15, %s1543_s0 }
  0x31   : > { %p1034_p2 = scmp.ne.s32.totalorder %s1032_s15, %s1033_s1  ;;  %p1040_p5 = scmp.lt.s32.totalorder %s1038_s21, %s1033_s1 }
  0x33   : > { %p1036_p12 = pnand %p1035_p11, %p1034_p2  ;;  %p1041_p7 = por %p1040_p5, %p1039_p0 }
  0x35   : > { %p1037_p13 = pneg %p1036_p12 }
  0x37   : > { %p1042_p9 = pnand %p1041_p7, %p1037_p13 }
  0x39   : > { %1045 = shalt.err (!%p1042_p9)
}
  0x3a   : > { %s1545_s18 = smov 8   ;;  %s1546_s14 = smov 128  }
  0x3b   : > { %871 = dma.hbm_to_vmem [thread:$0]  (!%p1342_p10), %s287_s10, 256, %s289_s29, %s277_s13, %s1546_s14, %s1546_s14, %s1545_s18  }
  0x3c   : > { %300 = sbr.rel (%p1290_p8) target bundleno = 503 (0x1f7), region = 40  ;;  %s1362_s20 = sand.u32 (!%p1290_p8), 1, %s1187_s25  }
  0x3d   : > { %s1365_s15 = sshll.u32 (!%p1290_p8), %s1362_s20, 4  ;;  %s303_s1 = scalar_lea.sflag (!%p1290_p8), [#allocation3], %s1362_s20 }
  0x3e   : > { %s306_s22 = scalar_lea.vmem (!%p1290_p8), [#allocation2], %s1365_s15 }
  0x41   : > { %1162 = dma.done.wait (%p1277_p4), %s303_s1, 256  }
  0x42   : > { %1164 = vsyncadd (%p1277_p4), %s303_s1, 4294967040 }
  0x43   : > { %1166 = dma.done.wait (%p50_p1), [#allocation6], 32  }
  0x44   : > { %1168 = vsyncadd (%p50_p1), [#allocation6], 4294967264 }
  0x45   : > { %1170 = dma.done.wait (%p50_p1), [#allocation9], 6144  }
  0x46   : > { %1172 = vsyncadd (%p50_p1), [#allocation9], 4294961152  ;;  %v363_v0 = vld [vmem:[%s306_s22] sm:$0xff]  ;;  %v364_v1 = vld [vmem:[%s306_s22 + $0x8] sm:$0xff]  ;;  %v1202_v2 = vmov 128.0   ;;  %s1547_s4 = sld [smem:[#allocation24_spill]] }
  0x47   : > { %367 = vadd.xlane.f32.xlu0 %v363_v0  ;;  %935 = vrcp.f32 %v1202_v2  ;;  %v439_v5 = vld [vmem:[#allocation8 + $0x78] sm:$0xff]  ;;  %v438_v8 = vld [vmem:[#allocation8 + $0x70] sm:$0xff]  ;;  %v437_v23 = vld [vmem:[#allocation8 + $0x68] sm:$0xff]  ;;  %s1404_s10 = sshll.u32 %s1266_s28, 4  ;;  %s1407_s16 = scalar_lea.vmem [#allocation10], %s1365_s15 }
  0x48   : > { %v483_v6 = vld [vmem:[#allocation8 + $0xf8] sm:$0xff]  ;;  %444 = vmatpush.msra.mxu0 %v439_v5  ;;  %v482_v9 = vld [vmem:[#allocation8 + $0xf0] sm:$0xff]  ;;  %822 = vmatpush.msra.mxu3 %v439_v5  ;;  %v481_v24 = vld [vmem:[#allocation8 + $0xe8] sm:$0xff]  ;;  %s602_s9 = scalar_lea.hbm %s1524_s6, %s1404_s10  ;;  %s355_s18 = scalar_lea.vmem [#allocation11], %s1365_s15 }
  0x49   : > { %v528_v7 = vld [vmem:[#allocation8 + $0x178] sm:$0xff]  ;;  %489 = vmatpush.msra.mxu1 %v483_v6  ;;  %v527_v10 = vld [vmem:[#allocation8 + $0x170] sm:$0xff]  ;;  %v526_v25 = vld [vmem:[#allocation8 + $0x168] sm:$0xff]  ;;  %s603_s14 = sshll.u32 %s355_s18, 4  ;;  %s568_s29 = sand.u32 1, %s1266_s28   ;;  %s1421_s14 = int_to_ptr.vmem [resolvable:$true] %s603_s14 }
  0x4a   : > { %534 = vmatpush.msra.mxu2 %v528_v7  ;;  %445 = vmatpush.msra.mxu0 %v438_v8  ;;  %v436_v26 = vld [vmem:[#allocation8 + $0x60] sm:$0xff]  ;;  %v435_v29 = vld [vmem:[#allocation8 + $0x58] sm:$0xff]  ;;  %v434_v32 = vld [vmem:[#allocation8 + $0x50] sm:$0xff]  ;;  %s1419_s30 = sshll.u32 %s602_s9, 4  ;;  %s1425_s12 = scalar_lea.vmem [#allocation13], %s1365_s15  ;;  %s606_s30 = int_to_ptr.hbm [resolvable:$true] %s1419_s30 }
  0x4b   : > { %490 = vmatpush.msra.mxu1 %v482_v9  ;;  %823 = vmatpush.msra.mxu3 %v438_v8  ;;  %v480_v27 = vld [vmem:[#allocation8 + $0xe0] sm:$0xff]  ;;  %v479_v30 = vld [vmem:[#allocation8 + $0xd8] sm:$0xff]  ;;  %v478_v33 = vld [vmem:[#allocation8 + $0xd0] sm:$0xff]  ;;  %s585_s23 = scalar_lea.hbm %s1523_s5, %s1404_s10  ;;  %s586_s28 = sshll.u32 %s1407_s16, 4  ;;  %s587_s28 = int_to_ptr.vmem [resolvable:$true] %s586_s28 }
  0x4c   : > { %535 = vmatpush.msra.mxu2 %v527_v10  ;;  %446 = vmatpush.msra.mxu0 %v437_v23  ;;  %v525_v28 = vld [vmem:[#allocation8 + $0x160] sm:$0xff]  ;;  %v524_v31 = vld [vmem:[#allocation8 + $0x158] sm:$0xff]  ;;  %v523_v34 = vld [vmem:[#allocation8 + $0x150] sm:$0xff]  ;;  %s619_s22 = scalar_lea.hbm %s1525_s7, %s1404_s10  ;;  %s1437_s0 = scalar_lea.sflag [#allocation12], %s568_s29 }
  0x4d   : > { %v936_v3 = vpop.eup %935  ;;  %491 = vmatpush.msra.mxu1 %v481_v24  ;;  %824 = vmatpush.msra.mxu3 %v437_v23  ;;  %v433_v35 = vld [vmem:[#allocation8 + $0x48] sm:$0xff]  ;;  %v432_v38 = vld [vmem:[#allocation8 + $0x40] sm:$0xff]  ;;  %v431_v41 = vld [vmem:[#allocation8 + $0x38] sm:$0xff]  ;;  %s1075_s2 = sshra.s32 %s606_s30, 4  ;;  %s1081_s13 = scalar_lea.hbm %s1524_s6, 32  ;;  %s1076_s2 = int_to_ptr.hbm [resolvable:$true] %s1075_s2 }
  0x4e   : > { %v372_v4 = vmul.f32 128.0, %v936_v3  ;;  %vm376_vm0 = vweird.f32 %v936_v3  ;;  %536 = vmatpush.msra.mxu2 %v526_v25  ;;  %447 = vmatpush.msra.mxu0 %v436_v26  ;;  %v477_v36 = vld [vmem:[#allocation8 + $0xc8] sm:$0xff]  ;;  %v476_v39 = vld [vmem:[#allocation8 + $0xc0] sm:$0xff]  ;;  %v475_v42 = vld [vmem:[#allocation8 + $0xb8] sm:$0xff]  ;;  %s1077_s3 = scalar_lea.hbm %s1076_s2, 16  ;;  %p1082_p9 = scmp.lt.s32.totalorder %s1076_s2, %s1524_s6 }
  0x4f   : > { %369 = vadd.xlane.f32.xlu0 %v364_v1  ;;  %492 = vmatpush.msra.mxu1 %v480_v27  ;;  %v522_v37 = vld [vmem:[#allocation8 + $0x148] sm:$0xff]  ;;  %v521_v40 = vld [vmem:[#allocation8 + $0x140] sm:$0xff]  ;;  %v520_v43 = vld [vmem:[#allocation8 + $0x138] sm:$0xff]  ;;  %p1078_p1 = scmp.ne.s32.totalorder %s1076_s2, %s1077_s3  ;;  %p1083_p10 = scmp.lt.s32.totalorder %s1081_s13, %s1077_s3 }
  0x50   : > { %v373_v11 = vsub.f32 1.0, %v372_v4  ;;  %537 = vmatpush.msra.mxu2 %v525_v28  ;;  %825 = vmatpush.msra.mxu3 %v436_v26  ;;  %v430_v44 = vld [vmem:[#allocation8 + $0x30] sm:$0xff]  ;;  %v429_v47 = vld [vmem:[#allocation8 + $0x28] sm:$0xff]  ;;  %v428_v50 = vld [vmem:[#allocation8 + $0x20] sm:$0xff] }
  0x51   : > { %448 = vmatpush.msra.mxu0 %v435_v29  ;;  %493 = vmatpush.msra.mxu1 %v479_v30  ;;  %v474_v45 = vld [vmem:[#allocation8 + $0xb0] sm:$0xff]  ;;  %v473_v48 = vld [vmem:[#allocation8 + $0xa8] sm:$0xff]  ;;  %v472_v51 = vld [vmem:[#allocation8 + $0xa0] sm:$0xff]  ;;  %p1079_p4 = pnand %p1078_p1, %p1332_p3  ;;  %p1084_p2 = por %p1083_p10, %p1082_p9 }
  0x52   : > { %v374_v12 = vmul.f32 %v936_v3, %v373_v11  ;;  %538 = vmatpush.msra.mxu2 %v524_v31  ;;  %826 = vmatpush.msra.mxu3 %v435_v29  ;;  %v519_v46 = vld [vmem:[#allocation8 + $0x130] sm:$0xff]  ;;  %v518_v49 = vld [vmem:[#allocation8 + $0x128] sm:$0xff]  ;;  %v517_v52 = vld [vmem:[#allocation8 + $0x120] sm:$0xff] }
  0x53   : > { %449 = vmatpush.msra.mxu0 %v434_v32  ;;  %494 = vmatpush.msra.mxu1 %v478_v33  ;;  %v427_v53 = vld [vmem:[#allocation8 + $0x18] sm:$0xff]  ;;  %v426_v56 = vld [vmem:[#allocation8 + $0x10] sm:$0xff]  ;;  %v425_v59 = vld [vmem:[#allocation8 + $0x8] sm:$0xff]  ;;  %p1080_p8 = pneg %p1079_p4 }
  0x54   : > { %v375_v13 = vadd.f32 %v936_v3, %v374_v12  ;;  %539 = vmatpush.msra.mxu2 %v523_v34  ;;  %827 = vmatpush.msra.mxu3 %v434_v32  ;;  %v471_v54 = vld [vmem:[#allocation8 + $0x98] sm:$0xff]  ;;  %v470_v57 = vld [vmem:[#allocation8 + $0x90] sm:$0xff]  ;;  %v469_v60 = vld [vmem:[#allocation8 + $0x88] sm:$0xff] }
  0x55   : > { %450 = vmatpush.msra.mxu0 %v433_v35  ;;  %495 = vmatpush.msra.mxu1 %v477_v36  ;;  %v516_v55 = vld [vmem:[#allocation8 + $0x118] sm:$0xff]  ;;  %v515_v58 = vld [vmem:[#allocation8 + $0x110] sm:$0xff]  ;;  %v514_v61 = vld [vmem:[#allocation8 + $0x108] sm:$0xff]  ;;  %p1085_p11 = pnand %p1084_p2, %p1080_p8 }
  0x56   : > { %v1381_v14 = vsel %vm376_vm0, %v936_v3, %v375_v13  ;;  %540 = vmatpush.msra.mxu2 %v522_v37  ;;  %828 = vmatpush.msra.mxu3 %v433_v35  ;;  %v424_v62 = vld [vmem:[#allocation8] sm:$0xff]  ;;  %v932_v30 = vld [vmem:[%s1547_s4] ss:$0 sm:$0xff]  ;;  %v933_v31 = vld [vmem:[%s1547_s4 + $0x1] ss:$0 sm:$0xff] }
  0x57   : > { %451 = vmatpush.msra.mxu0 %v432_v38  ;;  %496 = vmatpush.msra.mxu1 %v476_v39  ;;  %v468_v63 = vld [vmem:[#allocation8 + $0x80] sm:$0xff]  ;;  %v934_v35 = vld [vmem:[%s1547_s4 + $0x2] ss:$0 sm:$0xff] }
  0x58   : > { %541 = vmatpush.msra.mxu2 %v521_v40  ;;  %829 = vmatpush.msra.mxu3 %v432_v38 }
  0x59   : > { %452 = vmatpush.msra.mxu0 %v431_v41  ;;  %497 = vmatpush.msra.mxu1 %v475_v42 }
  0x5a   : > { %542 = vmatpush.msra.mxu2 %v520_v43  ;;  %830 = vmatpush.msra.mxu3 %v431_v41 }
  0x5b   : > { %453 = vmatpush.msra.mxu0 %v430_v44  ;;  %498 = vmatpush.msra.mxu1 %v474_v45 }
  0x5c   : > { %543 = vmatpush.msra.mxu2 %v519_v46  ;;  %831 = vmatpush.msra.mxu3 %v430_v44 }
  0x5d   : > { %454 = vmatpush.msra.mxu0 %v429_v47  ;;  %499 = vmatpush.msra.mxu1 %v473_v48 }
  0x5e   : > { %544 = vmatpush.msra.mxu2 %v518_v49  ;;  %832 = vmatpush.msra.mxu3 %v429_v47 }
  0x5f   : > { %455 = vmatpush.msra.mxu0 %v428_v50  ;;  %500 = vmatpush.msra.mxu1 %v472_v51 }
  0x60   : > { %545 = vmatpush.msra.mxu2 %v517_v52  ;;  %833 = vmatpush.msra.mxu3 %v428_v50 }
  0x61   : > { %456 = vmatpush.msra.mxu0 %v427_v53  ;;  %501 = vmatpush.msra.mxu1 %v471_v54 }
  0x62   : > { %546 = vmatpush.msra.mxu2 %v516_v55  ;;  %834 = vmatpush.msra.mxu3 %v427_v53 }
  0x63   : > { %457 = vmatpush.msra.mxu0 %v426_v56  ;;  %502 = vmatpush.msra.mxu1 %v470_v57 }
  0x64   : > { %547 = vmatpush.msra.mxu2 %v515_v58  ;;  %835 = vmatpush.msra.mxu3 %v426_v56 }
  0x65   : > { %458 = vmatpush.msra.mxu0 %v425_v59  ;;  %503 = vmatpush.msra.mxu1 %v469_v60 }
  0x66   : > { %548 = vmatpush.msra.mxu2 %v514_v61  ;;  %836 = vmatpush.msra.mxu3 %v425_v59 }
  0x67   : > { %459 = vmatpush.msra.mxu0 %v424_v62  ;;  %504 = vmatpush.msra.mxu1 %v468_v63 }
  0x68   : > { %837 = vmatpush.msra.mxu3 %v424_v62 }
  0xba   : > { %v368_v15 = vpop.xlane.xlu0 %367 }
  0xbb   : > { %v378_v16 = vmul.f32 %v1381_v14, %v368_v15 }
  0xbd   : > { %v1384_v17 = vsub.f32 %v363_v0, %v378_v16  ;;  %v513_v0 = vld [vmem:[#allocation8 + $0x100] sm:$0xff]  ;;  %v930_v16 = vld [vmem:[#allocation5] ss:$0 sm:$0xff] }
  0xbe   : > { %549 = vmatpush.msra.mxu2 %v513_v0 }
  0xbf   : > { %v382_v18 = vmul.f32 %v1384_v17, %v1384_v17 }
  0xc1   : > { %384 = vadd.xlane.f32.xlu1 %v382_v18 }
  0xc2   : > { %v370_v19 = vpop.xlane.xlu0 %369 }
  0xc3   : > { %v379_v20 = vmul.f32 %v1381_v14, %v370_v19 }
  0xc5   : > { %v1389_v21 = vsub.f32 %v364_v1, %v379_v20 }
  0xc7   : > { %v383_v22 = vmul.f32 %v1389_v21, %v1389_v21 }
  0xc9   : > { %386 = vadd.xlane.f32.xlu1 %v383_v22  ;;  %v931_v22 = vld [vmem:[#allocation7] ss:$0 sm:$0xff] }
 0x134   : > { %v385_v1 = vpop.xlane.xlu1 %384 }
 0x135   : > { %v388_v2 = vmul.f32 %v385_v1, %v1381_v14 }
 0x137   : > { %v390_v3 = vadd.f32 1e-05, %v388_v2 }
 0x139   : > { %937 = vrsqrt.f32 %v390_v3  ;;  %vm398_vm2 = vweird.f32 %v390_v3 }
 0x13c   : > { %v387_v4 = vpop.xlane.xlu1 %386 }
 0x13d   : > { %v389_v5 = vmul.f32 %v387_v4, %v1381_v14 }
 0x13f   : > { %v938_v6 = vpop.eup %937  ;;  %v391_v7 = vadd.f32 1e-05, %v389_v5 }
 0x140   : > { %v393_v8 = vmul.f32 %v938_v6, %v390_v3  ;;  %vm399_vm1 = vweird.f32 %v938_v6 }
 0x141   : > { %939 = vrsqrt.f32 %v391_v7  ;;  %vm400_vm3 = vmor %vm398_vm2, %vm399_vm1  ;;  %vm408_vm5 = vweird.f32 %v391_v7 }
 0x142   : > { %v394_v9 = vmul.f32 %v938_v6, %v393_v8 }
 0x144   : > { %v395_v10 = vmul.f32 0.5, %v394_v9 }
 0x146   : > { %v396_v11 = vsub.f32 1.5, %v395_v10 }
 0x147   : > { %v940_v12 = vpop.eup %939 }
 0x148   : > { %v397_v13 = vmul.f32 %v938_v6, %v396_v11  ;;  %v403_v15 = vmul.f32 %v940_v12, %v391_v7  ;;  %vm409_vm4 = vweird.f32 %v940_v12 }
 0x149   : > { %vm410_vm6 = vmor %vm408_vm5, %vm409_vm4 }
 0x14a   : > { %v401_v18 = vsel %vm400_vm3, %v938_v6, %v397_v13  ;;  %v404_v19 = vmul.f32 %v940_v12, %v403_v15 }
 0x14b   : > { %v412_v20 = vmul.f32 %v401_v18, %v1384_v17 }
 0x14c   : > { %v405_v14 = vmul.f32 0.5, %v404_v19 }
 0x14d   : > { %v417_v23 = vmul.f32 %v930_v16, %v412_v20 }
 0x14e   : > { %v406_v24 = vsub.f32 1.5, %v405_v14 }
 0x14f   : > { %v422_v25 = vadd.f32 %v931_v22, %v417_v23 }
 0x150   : > { %v407_v26 = vmul.f32 %v940_v12, %v406_v24 }
 0x151   : > { %460 = vmatmul.f32.vlgmr.msra.gmra.mxu0 %v422_v25  ;;  %505 = vmatmul.f32.vlgmr.msra.gmra.mxu1 %v422_v25 }
 0x152   : > { %v411_v27 = vsel %vm410_vm6, %v940_v12, %v407_v26  ;;  %550 = vmatmul.f32.vlgmr.msra.gmra.mxu2 %v422_v25 }
 0x153   : > { %v413_v28 = vmul.f32 %v411_v27, %v1389_v21 }
 0x155   : > { %v418_v29 = vmul.f32 %v930_v16, %v413_v28 }
 0x157   : > { %v423_v17 = vadd.f32 %v931_v22, %v418_v29 }
 0x159   : > { %463 = vmatmul.f32.vlgmr.msra.gmra.mxu3 %v423_v17  ;;  %508 = vmatmul.f32.gmra.mxu1 %v423_v17 }
 0x15a   : > { %553 = vmatmul.f32.gmra.mxu2 %v423_v17 }
 0x1ce   : > { %v461_v32 = vpop.f32.mrf.mxu0  ;;  %v506_v33 = vpop.f32.mrf.mxu1 }
 0x1cf   : > { %v462_v21 = vadd.f32 %v932_v30, %v461_v32  ;;  %v507_v34 = vadd.f32 %v933_v31, %v506_v33 }
 0x1d1   : > { %557 = vst [vmem:[%s1407_s16] sm:$0xff] %v462_v21 }
 0x1d2   : > { %559 = vst [vmem:[%s355_s18] sm:$0xff] %v507_v34 }
 0x1d5   : > { %v551_v36 = vpop.f32.mrf.mxu2 }
 0x1d6   : > { %v552_v37 = vadd.f32 %v934_v35, %v551_v36  ;;  %v509_v38 = vpop.f32.mrf.mxu1 }
 0x1d7   : > { %v510_v39 = vadd.f32 %v933_v31, %v509_v38 }
 0x1d8   : > { %561 = vst [vmem:[%s1425_s12] sm:$0xff] %v552_v37 }
 0x1d9   : > { %560 = vst [vmem:[%s355_s18 + $0x8] sm:$0xff] %v510_v39 }
 0x1da   : > { %1088 = shalt.err (!%p1085_p11)
}
 0x1db   : > { %s1203_s10 = smov 128   ;;  %s1204_s18 = smov 8  }
 0x1dc   : > { %853 = dma.vmem_to_hbm [thread:$0]  (%p1332_p3), %s1421_s14, 256, %s606_s30, %s1437_s0, %s1203_s10, %s1203_s10, %s1204_s18   ;;  %v464_v40 = vpop.f32.mrf.mxu3 }
 0x1dd   : > { %s1454_s4 = sshll.u32 %s585_s23, 4  ;;  %s620_s2 = sshll.u32 %s1425_s12, 4  ;;  %v465_v41 = vadd.f32 %v932_v30, %v464_v40  ;;  %v554_v42 = vpop.f32.mrf.mxu2  ;;  %s589_s4 = int_to_ptr.hbm [resolvable:$true] %s1454_s4  ;;  %s1460_s2 = int_to_ptr.vmem [resolvable:$true] %s620_s2 }
 0x1de   : > { %s1457_s3 = sshll.u32 %s619_s22, 4  ;;  %v555_v43 = vadd.f32 %v934_v35, %v554_v42  ;;  %s564_s17 = scalar_lea.sflag [#allocation4], %s1362_s20  ;;  %s623_s3 = int_to_ptr.hbm [resolvable:$true] %s1457_s3 }
 0x1df   : > { %558 = vst [vmem:[%s1407_s16 + $0x8] sm:$0xff] %v465_v41  ;;  %s1103_s14 = sshra.s32 %s589_s4, 4  ;;  %s1109_s9 = scalar_lea.hbm %s1523_s5, 32  ;;  %s1104_s14 = int_to_ptr.hbm [resolvable:$true] %s1103_s14 }
 0x1e0   : > { %562 = vst [vmem:[%s1425_s12 + $0x8] sm:$0xff] %v555_v43  ;;  %s1105_s29 = scalar_lea.hbm %s1104_s14, 16  ;;  %p1110_p5 = scmp.lt.s32.totalorder %s1104_s14, %s1523_s5 }
 0x1e1   : > { %p1106_p12 = scmp.ne.s32.totalorder %s1104_s14, %s1105_s29  ;;  %p1111_p7 = scmp.lt.s32.totalorder %s1109_s9, %s1105_s29 }
 0x1e3   : > { %p1107_p13 = pnand %p1106_p12, %p1332_p3  ;;  %p1112_p1 = por %p1111_p7, %p1110_p5 }
 0x1e5   : > { %p1108_p0 = pneg %p1107_p13 }
 0x1e7   : > { %p1113_p4 = pnand %p1112_p1, %p1108_p0 }
 0x1e9   : > { %1116 = shalt.err (!%p1113_p4)
}
 0x1ea   : > { %852 = dma.vmem_to_hbm [thread:$0]  (%p1332_p3), %s587_s28, 256, %s589_s4, %s564_s17, %s1203_s10, %s1203_s10, %s1204_s18  }
 0x1eb   : > { %s1131_s20 = sshra.s32 %s623_s3, 4  ;;  %s1137_s13 = scalar_lea.hbm %s1525_s7, 32  ;;  %s1132_s20 = int_to_ptr.hbm [resolvable:$true] %s1131_s20 }
 0x1ec   : > { %s1133_s16 = scalar_lea.hbm %s1132_s20, 16  ;;  %p1138_p2 = scmp.lt.s32.totalorder %s1132_s20, %s1525_s7 }
 0x1ed   : > { %p1134_p8 = scmp.ne.s32.totalorder %s1132_s20, %s1133_s16  ;;  %p1139_p11 = scmp.lt.s32.totalorder %s1137_s13, %s1133_s16 }
 0x1ef   : > { %p1135_p9 = pnand %p1134_p8, %p1332_p3  ;;  %p1140_p12 = por %p1139_p11, %p1138_p2 }
 0x1f1   : > { %p1136_p10 = pneg %p1135_p9 }
 0x1f3   : > { %p1141_p13 = pnand %p1140_p12, %p1136_p10 }
 0x1f5   : > { %1144 = shalt.err (!%p1141_p13)
}
 0x1f6   : > { %854 = dma.vmem_to_hbm [thread:$0]  (%p1332_p3), %s1460_s2, 256, %s623_s3, %s1437_s0, %s1203_s10, %s1203_s10, %s1204_s18  }
 0x1f7 PF: > { %s637_s28 = sand.u32 1, %s1183_s24   ;;  %p1548_p0 = scmp.ge.s32.totalorder %s1195_s27, 2 }
 0x1f8   : > { %s638_s4 = scalar_lea.sflag [#allocation4], %s637_s28 }
 0x1f9   : > { %p873_p5 = pnand %p1548_p0, %p1282_p6 }
 0x1fb   : > { %p874_p7 = pneg %p873_p5 }
 0x1fd   : > { %1174 = dma.done.wait (%p874_p7), %s638_s4, 256  }
 0x1fe   : > { %1176 = vsyncadd (%p874_p7), %s638_s4, 4294967040  ;;  %s1549_s19 = sadd.s32 4294967294, %s1195_s27  }
 0x1ff   : > { %s647_s17 = sand.u32 1, %s1549_s19  }
 0x200   : > { %s648_s29 = scalar_lea.sflag [#allocation12], %s647_s17 }
 0x201   : > { %1178 = dma.done.wait (%p874_p7), %s648_s29, 512  }
 0x202   : > { %1180 = vsyncadd (%p874_p7), %s648_s29, 4294966784  ;;  %s1550_s0 = sld [smem:[#allocation19_spill]]  ;;  %p26_p3 = scmp.ge.s32.totalorder %s1319_s11, 4  }
 0x203   : > { %s1551_s24 = smov %s1187_s25  ;;  %s1552_s25 = smov %s1191_s26 }
 0x204   : > { %s1554_s27 = smov %s1319_s11  ;;  %28 = sbr.rel (!%p26_p3) target bundleno = 15 (0xf), region = 133 }
 0x208   : > { %s1553_s26 = smov %s1550_s0 }
 0x209   :  { %664 = vsyncpa [#allocation3], 1 }
 0x20a   :  { %666 = vsyncpa [#allocation3 + $0x1], 1 }
 0x20b   :  { %667 = vsyncpa [#allocation6], 1 }
 0x20c   :  { %668 = vsyncpa [#allocation9], 1 }
 0x20d   :  { %669 = vsyncpa [#allocation4], 1 }
 0x20e   :  { %671 = vsyncpa [#allocation4 + $0x1], 1 }
 0x20f   :  { %672 = vsyncpa [#allocation12], 1 }
 0x210   :  { %674 = vsyncpa [#allocation12 + $0x1], 1 }

</bundles_post_ra>
